<compile_context>
chip_gen: v5e
topology: v5e:2x2
jax: 0.10.0
libtpu: 0.0.40
codegen_flags: <defaults>
</compile_context>

<pallas_src>
import jax
import jax.numpy as jnp
from jax.experimental import pallas as pl
from jax.experimental.pallas import tpu as pltpu


def coral_kernel(x_ref, w_ref, b_ref, o_ref, acc_ref):
    # x_ref: (TN, TD); w_ref: (TD, 1); b_ref: (1, K-1);
    # o_ref: (TN, K-1); acc_ref: (TN, 1) f32 scratch, resident across D steps.
    k = pl.program_id(1)

    @pl.when(k == 0)
    def _():
        acc_ref[...] = jnp.zeros_like(acc_ref)

    acc_ref[...] += jnp.dot(
        x_ref[...], w_ref[...], preferred_element_type=jnp.float32
    )

    @pl.when(k == pl.num_programs(1) - 1)
    def _():
        # Single epilogue pass: lane-broadcast (TN,1) across K-1 columns,
        # add the (1,K-1) bias, cast to the output dtype.
        o_ref[...] = (acc_ref[...] + b_ref[...]).astype(o_ref.dtype)


def _vmem_budgets():
    """(vmem_limit_bytes, x_tile_budget_bytes) sized to the chip's VMEM."""
    mib = 1024 * 1024
    try:
        vmem_cap = pltpu.get_tpu_info().vmem_capacity_bytes
    except Exception:
        vmem_cap = 64 * mib  # v7x per-TC size: safe lower bound everywhere
    vmem_limit = min(vmem_cap - 8 * mib, 96 * mib)    # 56 MiB v7x, 96 MiB v5e/v6e
    x_budget = min(vmem_limit - 16 * mib, 64 * mib)   # 40 MiB v7x, 64 MiB v5e/v6e
    return int(vmem_limit), int(x_budget)


def _choose_d_tile(d, cap=4096):
    """Return (td, d_padded). td == d, or a 128-multiple divisor of d <= cap.
    If neither exists (large, awkward D) keep td = cap and zero-pad D in the
    wrapper so no garbage ever feeds the reduction."""
    if d <= cap:
        return d, d
    t = (cap // 128) * 128
    while t >= 128:
        if d % t == 0:
            return t, d
        t -= 128
    td = (cap // 128) * 128
    d_pad = -(-d // td) * td
    return td, d_pad


def _choose_n_tile(n, td, itemsize, x_budget_bytes, row_tile=1024):
    """Row tile up to 1024 rows, aligned to the dtype's sublane packing and
    capped so the double-buffered x tile stays within the VMEM budget."""
    sub = max(8, 32 // itemsize)                 # 8 f32, 16 bf16, 32 int8/fp8
    max_rows = x_budget_bytes // (2 * td * itemsize)
    cap = min(row_tile, max(sub, (max_rows // sub) * sub))
    if n <= cap:
        return n       # block dim == full array dim: always layout-legal
    return cap         # sublane-aligned; partial last block stores are masked


def coral_layer(x, weight, bias):
    """x: (N, D); weight: (D, 1) / (1, D) / (D,); bias: (K-1,) -> (N, K-1)."""
    n, d = x.shape
    km1 = bias.shape[-1]
    itemsize = x.dtype.itemsize

    # Weight in its native single-column form (no K-1 replication in HBM).
    w_col = weight.reshape(d, 1).astype(x.dtype)
    bias2d = bias.reshape(1, km1).astype(jnp.float32)

    vmem_limit, x_budget = _vmem_budgets()
    td, d_pad = _choose_d_tile(d)
    if d_pad != d:
        # Rare path: zero-pad the reduction axis (exact; padded cols add 0)
        # rather than using a whole-D block that would shrink TN to the floor.
        x = jnp.pad(x, ((0, 0), (0, d_pad - d)))
        w_col = jnp.pad(w_col, ((0, d_pad - d), (0, 0)))
    tn = _choose_n_tile(n, td, itemsize, x_budget)
    grid = (pl.cdiv(n, tn), d_pad // td)

    cost = pl.CostEstimate(
        flops=2 * n * d + n * km1,
        transcendentals=0,
        bytes_accessed=(
            n * d_pad * itemsize            # x, read exactly once
            + grid[0] * d_pad * itemsize    # weight column, re-fetched per N tile
            + km1 * 4                       # bias
            + n * km1 * itemsize            # logits written
        ),
    )

    return pl.pallas_call(
        coral_kernel,
        out_shape=jax.ShapeDtypeStruct((n, km1), x.dtype),
        grid=grid,
        in_specs=[
            pl.BlockSpec((tn, td), lambda i, k: (i, k)),
            pl.BlockSpec((td, 1), lambda i, k: (k, 0)),
            pl.BlockSpec((1, km1), lambda i, k: (0, 0)),
        ],
        out_specs=pl.BlockSpec((tn, km1), lambda i, k: (i, 0)),
        scratch_shapes=[pltpu.VMEM((tn, 1), jnp.float32)],
        compiler_params=pltpu.CompilerParams(
            dimension_semantics=("parallel", "arbitrary"),
            vmem_limit_bytes=vmem_limit,
        ),
        cost_estimate=cost,
    )(x, w_col, bias2d)


def init_coral_params(key, size_in, num_classes, preinit_bias=True):
    """Deterministic synthetic init mirroring CoralLayer.__init__ shapes."""
    # nn.Linear(size_in, 1, bias=False) -> weight (1, size_in); stored here as
    # its transpose (size_in, 1). Values follow PyTorch's U(-1/sqrt(D), 1/sqrt(D)).
    bound = 1.0 / (size_in ** 0.5)
    w = jax.random.uniform(key, (size_in, 1), jnp.float32, -bound, bound)
    if preinit_bias:
        b = jnp.arange(num_classes - 1, 0, -1, dtype=jnp.float32) / (num_classes - 1)
    else:
        b = jnp.zeros((num_classes - 1,), jnp.float32)
    return w, b


if __name__ == "__main__":
    key = jax.random.PRNGKey(0)
    k_x, k_w = jax.random.split(key)

    num_examples = 8
    size_in = 32
    num_classes = 5   # -> logits have 4 columns

    x = jax.random.normal(k_x, (num_examples, size_in), jnp.float32)
    w, b = init_coral_params(k_w, size_in, num_classes, preinit_bias=True)

    logits = coral_layer(x, w, b)
    jax.block_until_ready(logits)

    # Sanity check against plain JAX reference.
    ref = x @ w + b[None, :]
    assert logits.shape == (num_examples, num_classes - 1)
    assert jnp.allclose(logits, ref, atol=1e-5, rtol=1e-5)

    print("KERNEL_OK")
</pallas_src>

<mosaic_0001>
module attributes {stable_mosaic.version = 11 : i64} {
  func.func @coral_kernel(%arg0: i32, %arg1: i32, %arg2: memref<8x32xf32, #tpu.memory_space<vmem>>, %arg3: memref<32x1xf32, #tpu.memory_space<vmem>>, %arg4: memref<1x4xf32, #tpu.memory_space<vmem>>, %arg5: memref<8x4xf32, #tpu.memory_space<vmem>>, %arg6: memref<8x1xf32, #tpu.memory_space<vmem>>) attributes {dimension_semantics = [#tpu.dimension_semantics<parallel>, #tpu.dimension_semantics<arbitrary>], iteration_bounds = array<i64: 1, 1>, scalar_prefetch = 0 : i64, scratch_operands = 1 : i64, tpu.core_type = #tpu.core_type<tc>, window_params = [{transform_indices = @transform_0, window_bounds = array<i64: 8, 32>}, {transform_indices = @transform_1, window_bounds = array<i64: 32, 1>}, {pipeline_mode = #tpu.pipeline_mode<synchronous>, transform_indices = @transform_2, window_bounds = array<i64: 1, 4>}, {transform_indices = @transform_3, window_bounds = array<i64: 8, 4>}]} {
    %c0_i32 = arith.constant 0 : i32
    %0 = arith.cmpi eq, %arg1, %c0_i32 : i32
    %1 = arith.extui %0 : i1 to i32
    %c0_i32_0 = arith.constant 0 : i32
    %2 = arith.cmpi ne, %1, %c0_i32_0 : i32
    scf.if %2 {
      %cst_10 = arith.constant 0.000000e+00 : f32
      %12 = vector.broadcast %cst_10 : f32 to vector<8x1xf32>
      %c0_11 = arith.constant 0 : index
      %c0_12 = arith.constant 0 : index
      %13 = vector.load %arg6[%c0_11, %c0_12] : memref<8x1xf32, #tpu.memory_space<vmem>>, vector<8x1xf32>
      tpu.vector_store %arg6[%c0_11, %c0_12], %12 {strides = array<i32>} : memref<8x1xf32, #tpu.memory_space<vmem>>, vector<8x1xf32>,
    } else {
    }
    %c0 = arith.constant 0 : index
    %c0_1 = arith.constant 0 : index
    %3 = vector.load %arg6[%c0, %c0_1] : memref<8x1xf32, #tpu.memory_space<vmem>>, vector<8x1xf32>
    %c0_2 = arith.constant 0 : index
    %c0_3 = arith.constant 0 : index
    %4 = vector.load %arg2[%c0_2, %c0_3] : memref<8x32xf32, #tpu.memory_space<vmem>>, vector<8x32xf32>
    %c0_4 = arith.constant 0 : index
    %c0_5 = arith.constant 0 : index
    %5 = vector.load %arg3[%c0_4, %c0_5] : memref<32x1xf32, #tpu.memory_space<vmem>>, vector<32x1xf32>
    %cst = arith.constant dense<0.000000e+00> : vector<8x1xf32>
    %6 = tpu.matmul %4, %5, %cst {dimension_numbers = #tpu.dot_dimension_numbers<[1], [0], [0], [1], [0, 0, 1, 1], [], []>} : vector<8x32xf32>, vector<32x1xf32>, vector<8x1xf32> -> vector<8x1xf32>
    %7 = arith.addf %3, %6 : vector<8x1xf32>
    %c0_6 = arith.constant 0 : index
    %c0_7 = arith.constant 0 : index
    %8 = vector.load %arg6[%c0_6, %c0_7] : memref<8x1xf32, #tpu.memory_space<vmem>>, vector<8x1xf32>
    tpu.vector_store %arg6[%c0_6, %c0_7], %7 {strides = array<i32>} : memref<8x1xf32, #tpu.memory_space<vmem>>, vector<8x1xf32>,
    %c0_i32_8 = arith.constant 0 : i32
    %9 = arith.cmpi eq, %arg1, %c0_i32_8 : i32
    %10 = arith.extui %9 : i1 to i32
    %c0_i32_9 = arith.constant 0 : i32
    %11 = arith.cmpi ne, %10, %c0_i32_9 : i32
    scf.if %11 {
      %c0_10 = arith.constant 0 : index
      %c0_11 = arith.constant 0 : index
      %12 = vector.load %arg6[%c0_10, %c0_11] : memref<8x1xf32, #tpu.memory_space<vmem>>, vector<8x1xf32>
      %c0_12 = arith.constant 0 : index
      %c0_13 = arith.constant 0 : index
      %13 = vector.load %arg4[%c0_12, %c0_13] : memref<1x4xf32, #tpu.memory_space<vmem>>, vector<1x4xf32>
      %14 = vector.broadcast %12 : vector<8x1xf32> to vector<8x4xf32>
      %15 = vector.broadcast %13 : vector<1x4xf32> to vector<8x4xf32>
      %16 = arith.addf %14, %15 : vector<8x4xf32>
      %c0_14 = arith.constant 0 : index
      %c0_15 = arith.constant 0 : index
      %17 = vector.load %arg5[%c0_14, %c0_15] : memref<8x4xf32, #tpu.memory_space<vmem>>, vector<8x4xf32>
      tpu.vector_store %arg5[%c0_14, %c0_15], %16 {strides = array<i32>} : memref<8x4xf32, #tpu.memory_space<vmem>>, vector<8x4xf32>,
    } else {
    }
    return
  }
  func.func @transform_0(%arg0: i32, %arg1: i32) -> (i32, i32) {
    %c0_i32 = arith.constant 0 : i32
    return %arg0, %arg1 : i32, i32
  }
  func.func @transform_1(%arg0: i32, %arg1: i32) -> (i32, i32) {
    %c0_i32 = arith.constant 0 : i32
    %c0_i32_0 = arith.constant 0 : i32
    return %arg1, %c0_i32 : i32, i32
  }
  func.func @transform_2(%arg0: i32, %arg1: i32) -> (i32, i32) {
    %c0_i32 = arith.constant 0 : i32
    %c0_i32_0 = arith.constant 0 : i32
    %c0_i32_1 = arith.constant 0 : i32
    return %c0_i32, %c0_i32_0 : i32, i32
  }
  func.func @transform_3(%arg0: i32, %arg1: i32) -> (i32, i32) {
    %c0_i32 = arith.constant 0 : i32
    %c0_i32_0 = arith.constant 0 : i32
    return %arg0, %c0_i32 : i32, i32
  }
}

</mosaic_0001>

<bundles_post_ra>
// kernel: tpu_custom_call.1
= control target key start
LH: loop header
LB: loop body
LE: loop exit
PB: predicated region body
PF: predicated region fallthrough
CT: control target
= control target key end

     0   :  { %vm18_vm0 = vcmask 7168   ;;  %v78_v2 = vmov 0.0   ;;  %vm26_vm1 = vcmask 261120   ;;  %v79_v6 = vmov 0   ;;  %s123_s1 = inlined_call_operand.vmem [shape: f32[32,1], index: 1, kind: input, shape index: {}]   ;;  %s124_s0 = inlined_call_operand.vmem [shape: f32[8,32], index: 0, kind: input, shape index: {}]   ;;  %s125_s2 = inlined_call_operand.vmem [shape: f32[1,4], index: 2, kind: input, shape index: {}]   ;;  %s126_s3 = inlined_call_operand.vmem [shape: f32[8,4], index: 3, kind: output, shape index: {}]  }
   0x1   :  { %v25_v0 = vld [vmem:[%s123_s1 + $0x18] sm:$0xff]  ;;  %v24_v1 = vld [vmem:[%s123_s1 + $0x10] sm:$0xff]  ;;  %19 = vst.msk [vmem:[#allocation2] sm:$0xff] %vm18_vm0, %v78_v2  ;;  %v23_v3 = vld [vmem:[%s123_s1 + $0x8] sm:$0xff]  ;;  %76 = vset.pattern.permute.xlu0 %v79_v6  ;;  %vm67_vm2 = vcmask 31744  }
   0x2   :  { %42 = vmatpush.msra.mxu0 %v25_v0  ;;  %v22_v4 = vld [vmem:[%s123_s1] sm:$0xff] }
   0x3   :  { %v21_v5 = vld [vmem:[%s124_s0] sm:$0xff] }
   0x4   :  { %43 = vmatpush.msra.mxu0 %v24_v1  ;;  %v77_v11 = vld [vmem:[%s125_s2] ss:$0 sm:$0xff] }
   0x6   :  { %44 = vmatpush.msra.mxu0 %v23_v3 }
   0x8   :  { %45 = vmatpush.msra.mxu0 %v22_v4  ;;  %v20_v7 = vld [vmem:[#allocation2] sm:$0xff] }
   0x9   :  { %73 = vmatmul.msk.f32.vlgmr.msra.gmra.mxu0 %vm26_vm1, %v21_v5 }
  0x86   :  { %v47_v8 = vpop.f32.mrf.mxu0 }
  0x87   :  { %v50_v9 = vadd.f32 %v47_v8, %v20_v7 }
  0x89   :  { %52 = vst.msk [vmem:[#allocation2] sm:$0xff] %vm18_vm0, %v50_v9 }
  0x90   :  { %v56_v10 = vld [vmem:[#allocation2] sm:$0xff] }
  0x91   :  { %60 = vperm.xlu0 %76, %v56_v10  }
 0x103   :  { %v61_v12 = vpop.permute.xlu0 %60 }
 0x104   :  { %v66_v13 = vadd.f32 %v77_v11, %v61_v12 }
 0x106   :  { %68 = vst.msk [vmem:[%s126_s3] sm:$0xff] %vm67_vm2, %v66_v13 }

</bundles_post_ra>
